<compile_context>
chip_gen: v7x
topology: tpu7x:2x2x1
jax: 0.10.0
libtpu: 0.0.40
codegen_flags: <defaults>
</compile_context>

<pallas_src>
import math

import jax
import jax.numpy as jnp
from jax.experimental import pallas as pl
from jax.experimental.pallas import tpu as pltpu


def _round_up(x, m):
    return (x + m - 1) // m * m


# ---------------------------------------------------------------------------
# Kernel
# ---------------------------------------------------------------------------
def mlm_head_kernel(x_ref, w1_ref, b1_ref, lnw_ref, lnb_ref,
                    wdec_ref, bdec_ref, out_ref, h_ref):
    # x_ref:    (tile_n, H)      tile of flattened sequence outputs
    # w1_ref:   (H, H)           dense weight, pre-transposed to (in, out)
    # b1_ref:   (1, H)           dense bias
    # lnw_ref:  (1, H)           LayerNorm weight
    # lnb_ref:  (1, H)           LayerNorm bias
    # wdec_ref: (H, tile_v)      decoder weight tile, pre-transposed to (H, V)
    # bdec_ref: (1, tile_v)      decoder bias tile
    # out_ref:  (tile_n, tile_v) prediction-score tile
    # h_ref:    (tile_n, H)      VMEM scratch holding transform(x), reused for
    #                            every v-tile of the current n-tile.

    @pl.when(pl.program_id(1) == 0)
    def _compute_transform():
        # dense: x @ W1^T (pre-transposed) + b1, f32 accumulate on the MXU
        h = jnp.dot(x_ref[...], w1_ref[...],
                    preferred_element_type=jnp.float32)
        h = h + b1_ref[...].astype(jnp.float32)

        # traditional gelu: x * 0.5 * (1 + erf(x / sqrt(2)))   (f32)
        h = h * 0.5 * (1.0 + jax.lax.erf(h * (1.0 / math.sqrt(2.0))))

        # LayerNorm over hidden axis, eps = 1e-12 (BertLayerNorm).
        # One-pass variance: E[x^2] - mean^2 (both reductions independent).
        mean = jnp.mean(h, axis=-1, keepdims=True)
        mean_sq = jnp.mean(h * h, axis=-1, keepdims=True)
        var = mean_sq - mean * mean
        normed = (h - mean) * jax.lax.rsqrt(var + 1e-12)
        h = (lnw_ref[...].astype(jnp.float32) * normed
             + lnb_ref[...].astype(jnp.float32))

        h_ref[...] = h.astype(h_ref.dtype)

    # decoder tile: h @ Wdec^T[:, v_tile] + bias[v_tile]
    logits = jnp.dot(h_ref[...], wdec_ref[...],
                     preferred_element_type=jnp.float32)
    logits = logits + bdec_ref[...].astype(jnp.float32)
    out_ref[...] = logits.astype(out_ref.dtype)


# ---------------------------------------------------------------------------
# Parameter preparation (do ONCE, cache across forward calls)
# ---------------------------------------------------------------------------
def prepare_mlm_head_params(params, *, compute_dtype=jnp.bfloat16, tile_v=2048):
    """Transpose, cast and vocab-pad the MLM-head weights once.

    Cache the returned dict and reuse it across forward calls so the (V, H)
    decoder-weight transpose + cast is not re-done (and re-streamed through
    HBM) on every call.  tile_v is forced to a multiple of 128 (lane-dense
    output stores); the vocab is zero-padded to a multiple of tile_v.
    """
    H = params["dense_w"].shape[0]
    V = params["decoder_w"].shape[0]

    tile_v = max(128, min(_round_up(tile_v, 128), _round_up(V, 128)))
    V_pad = _round_up(V, tile_v)

    w1_t = jnp.transpose(params["dense_w"])       # (H_in, H_out)
    wdec_t = jnp.transpose(params["decoder_w"])   # (H, V)
    bdec = params["decoder_b"]
    if V_pad != V:
        wdec_t = jnp.pad(wdec_t, ((0, 0), (0, V_pad - V)))
        bdec = jnp.pad(bdec, (0, V_pad - V))

    if compute_dtype is not None:
        w1_t = w1_t.astype(compute_dtype)
        wdec_t = wdec_t.astype(compute_dtype)

    return {
        "w1_t": w1_t,                              # (H, H)
        "b1": params["dense_b"].reshape(1, H),
        "ln_w": params["ln_w"].reshape(1, H),
        "ln_b": params["ln_b"].reshape(1, H),
        "wdec_t": wdec_t,                          # (H, V_pad)
        "bdec": bdec.reshape(1, V_pad),
        "vocab_size": V,
        "tile_v": tile_v,
        "compute_dtype": compute_dtype,
    }


def _vmem_limit_bytes(estimate):
    # Clamp the requested scoped-VMEM limit to the device's physical VMEM
    # minus headroom (v7x: 64 MiB per TensorCore; v5e/v6e: 128 MiB).
    try:
        cap = pltpu.get_tpu_info().vmem_capacity_bytes
    except Exception:
        cap = 64 << 20  # be conservative if the query is unavailable
    budget = max(32 << 20, cap - (8 << 20))
    return max(32 << 20, min(int(estimate * 1.25) + (2 << 20), budget))


# Whether pipeline_mode=pl.Buffered(...) is supported on this JAX version
# (probed lazily on first call; falls back to default double-buffering).
_PIPELINE_MODE_OK = None


# ---------------------------------------------------------------------------
# Forward (hot path) — takes prepared params
# ---------------------------------------------------------------------------
def mlm_head_apply(sequence_output, prepared, *, tile_n=1024, out_dtype=None,
                   decoder_buffers=2):
    """sequence_output [B, S, H] -> prediction_scores [B, S, V].

    tile_n should be large (~768-1024, multiple of 8) on v6e/v7x so the
    re-streamed (H, tile_v) decoder weight tile is compute-bound; it is
    clamped/padded automatically.  On v7x prefer an even number of n-tiles
    so both TensorCores stay busy.  Set decoder_buffers=3 only if DMA is
    still exposed after raising tile_n (costs one extra weight tile of VMEM).
    """
    global _PIPELINE_MODE_OK

    B, S, H = sequence_output.shape
    V = prepared["vocab_size"]
    V_pad = prepared["wdec_t"].shape[1]
    tile_v = prepared["tile_v"]
    compute_dtype = prepared["compute_dtype"]

    N = B * S
    x2d = sequence_output.reshape(N, H)
    if compute_dtype is not None:
        x2d = x2d.astype(compute_dtype)

    if out_dtype is None:
        # bf16 logits by default when computing in bf16: halves the dominant
        # [N, V] writeback and the output double-buffer VMEM.
        out_dtype = compute_dtype if compute_dtype is not None else sequence_output.dtype

    # Token tiling: multiple of 8; pad N and slice the padded rows off later.
    tile_n = max(8, _round_up(tile_n, 8))
    tile_n = min(tile_n, _round_up(N, 8))
    N_pad = _round_up(N, tile_n)
    if N_pad != N:
        x2d = jnp.pad(x2d, ((0, N_pad - N), (0, 0)))

    grid = (N_pad // tile_n, V_pad // tile_v)
    h_dtype = prepared["wdec_t"].dtype

    isz = lambda a: jnp.dtype(a.dtype).itemsize
    out_isz = jnp.dtype(out_dtype).itemsize
    vmem_est = (
        2 * tile_n * H * isz(x2d)                          # x tiles (dbl-buf)
        + H * H * isz(prepared["w1_t"])                    # dense W (single)
        + 4 * H * 4                                        # bias / LN vectors
        + max(2, decoder_buffers) * H * tile_v * isz(prepared["wdec_t"])
        + 2 * tile_v * 4                                   # decoder bias tile
        + 2 * tile_n * tile_v * out_isz                    # output tiles
        + tile_n * H * jnp.dtype(h_dtype).itemsize         # h scratch
    )

    def build_in_specs(use_pipeline_mode):
        const_map = lambda i, j: (0, 0)
        if use_pipeline_mode:
            # Grid-invariant inputs: never re-DMA'd, so single-buffer them.
            inv = lambda shape: pl.BlockSpec(shape, const_map,
                                             pipeline_mode=pl.Buffered(1))
            if decoder_buffers != 2:
                wdec_spec = pl.BlockSpec((H, tile_v), lambda i, j: (0, j),
                                         pipeline_mode=pl.Buffered(decoder_buffers))
            else:
                wdec_spec = pl.BlockSpec((H, tile_v), lambda i, j: (0, j))
        else:
            inv = lambda shape: pl.BlockSpec(shape, const_map)
            wdec_spec = pl.BlockSpec((H, tile_v), lambda i, j: (0, j))
        return [
            pl.BlockSpec((tile_n, H), lambda i, j: (i, 0)),   # x tile
            inv((H, H)),                                      # dense W^T
            inv((1, H)),                                      # dense bias
            inv((1, H)),                                      # LN weight
            inv((1, H)),                                      # LN bias
            wdec_spec,                                        # decoder W^T tile
            pl.BlockSpec((1, tile_v), lambda i, j: (0, j)),   # decoder bias tile
        ]

    def run(use_pipeline_mode):
        return pl.pallas_call(
            mlm_head_kernel,
            out_shape=jax.ShapeDtypeStruct((N_pad, V_pad), out_dtype),
            grid_spec=pltpu.PrefetchScalarGridSpec(
                num_scalar_prefetch=0,
                grid=grid,
                in_specs=build_in_specs(use_pipeline_mode),
                out_specs=pl.BlockSpec((tile_n, tile_v), lambda i, j: (i, j)),
                scratch_shapes=[pltpu.VMEM((tile_n, H), h_dtype)],
            ),
            compiler_params=pltpu.CompilerParams(
                # N is safely parallel (megacore); V must stay "arbitrary"
                # because the transform is computed only at j == 0.
                dimension_semantics=("parallel", "arbitrary"),
                vmem_limit_bytes=_vmem_limit_bytes(vmem_est)),
        )(x2d, prepared["w1_t"], prepared["b1"], prepared["ln_w"],
          prepared["ln_b"], prepared["wdec_t"], prepared["bdec"])

    if _PIPELINE_MODE_OK is None:
        try:
            out = run(True)
            _PIPELINE_MODE_OK = True
        except Exception:
            _PIPELINE_MODE_OK = False
            out = run(False)
    else:
        out = run(_PIPELINE_MODE_OK)

    out = out[:N, :V]
    return out.reshape(B, S, V)


def bert_only_mlm_head(sequence_output, params, *, tile_n=1024, tile_v=2048,
                       compute_dtype=jnp.bfloat16, out_dtype=None):
    """Convenience wrapper (prepare + apply).  For repeated calls, call
    prepare_mlm_head_params once and mlm_head_apply per call instead so the
    decoder-weight transpose/cast is not re-done each forward."""
    prepared = prepare_mlm_head_params(params, compute_dtype=compute_dtype,
                                       tile_v=tile_v)
    return mlm_head_apply(sequence_output, prepared, tile_n=tile_n,
                          out_dtype=out_dtype)


# ---------------------------------------------------------------------------
# Parameters / reference
# ---------------------------------------------------------------------------
def init_params(key, hidden_size, vocab_size):
    k1, k2 = jax.random.split(key, 2)
    return {
        "dense_w": jax.random.normal(k1, (hidden_size, hidden_size),
                                     jnp.float32) * 0.02,
        "dense_b": jnp.zeros((hidden_size,), jnp.float32),
        "ln_w": jnp.ones((hidden_size,), jnp.float32),
        "ln_b": jnp.zeros((hidden_size,), jnp.float32),
        # tied bert_model_embedding_weights: (vocab_size, hidden_size)
        "decoder_w": jax.random.normal(k2, (vocab_size, hidden_size),
                                       jnp.float32) * 0.02,
        "decoder_b": jnp.zeros((vocab_size,), jnp.float32),
    }


def reference(sequence_output, params):
    x = sequence_output
    h = x @ params["dense_w"].T + params["dense_b"]
    h = h * 0.5 * (1.0 + jax.lax.erf(h / math.sqrt(2.0)))
    mean = h.mean(-1, keepdims=True)
    var = ((h - mean) ** 2).mean(-1, keepdims=True)
    h = params["ln_w"] * ((h - mean) / jnp.sqrt(var + 1e-12)) + params["ln_b"]
    return h @ params["decoder_w"].T + params["decoder_b"]


if __name__ == "__main__":
    B, S, H, V = 2, 8, 32, 64
    key = jax.random.PRNGKey(0)
    kx, kp = jax.random.split(key)
    sequence_output = jax.random.normal(kx, (B, S, H), jnp.float32)
    params = init_params(kp, H, V)
    ref = reference(sequence_output, params)

    # 1) f32 path: tight check against the reference.
    prepared_f32 = prepare_mlm_head_params(params, compute_dtype=None)
    scores_f32 = mlm_head_apply(sequence_output, prepared_f32,
                                out_dtype=jnp.float32)
    scores_f32 = jax.block_until_ready(scores_f32)
    assert scores_f32.shape == (B, S, V)
    assert jnp.allclose(scores_f32, ref, atol=1e-4, rtol=1e-4)

    # 2) production defaults: cached bf16 weights + bf16 logits (loose check —
    #    expected bf16 precision loss, not a bug).
    prepared_bf16 = prepare_mlm_head_params(params)   # compute_dtype=bfloat16
    scores_bf16 = mlm_head_apply(sequence_output, prepared_bf16)
    scores_bf16 = jax.block_until_ready(scores_bf16)
    assert scores_bf16.shape == (B, S, V)
    assert jnp.allclose(scores_bf16.astype(jnp.float32), ref,
                        atol=5e-2, rtol=5e-2)

    print("KERNEL_OK")
</pallas_src>

<mosaic_0001>
module attributes {stable_mosaic.version = 11 : i64} {
  func.func @mlm_head_kernel(%arg0: i32, %arg1: i32, %arg2: memref<16x32xf32, #tpu.memory_space<vmem>>, %arg3: memref<32x32xf32, #tpu.memory_space<vmem>>, %arg4: memref<1x32xf32, #tpu.memory_space<vmem>>, %arg5: memref<1x32xf32, #tpu.memory_space<vmem>>, %arg6: memref<1x32xf32, #tpu.memory_space<vmem>>, %arg7: memref<32x128xf32, #tpu.memory_space<vmem>>, %arg8: memref<1x128xf32, #tpu.memory_space<vmem>>, %arg9: memref<16x128xf32, #tpu.memory_space<vmem>>, %arg10: memref<16x32xf32, #tpu.memory_space<vmem>>) attributes {dimension_semantics = [#tpu.dimension_semantics<parallel>, #tpu.dimension_semantics<arbitrary>], iteration_bounds = array<i64: 1, 1>, scalar_prefetch = 0 : i64, scratch_operands = 1 : i64, tpu.core_type = #tpu.core_type<tc>, window_params = [{transform_indices = @transform_0, window_bounds = array<i64: 16, 32>}, {pipeline_mode = #tpu.pipeline_mode<synchronous>, transform_indices = @transform_1, window_bounds = array<i64: 32, 32>}, {pipeline_mode = #tpu.pipeline_mode<synchronous>, transform_indices = @transform_2, window_bounds = array<i64: 1, 32>}, {pipeline_mode = #tpu.pipeline_mode<synchronous>, transform_indices = @transform_3, window_bounds = array<i64: 1, 32>}, {pipeline_mode = #tpu.pipeline_mode<synchronous>, transform_indices = @transform_4, window_bounds = array<i64: 1, 32>}, {transform_indices = @transform_5, window_bounds = array<i64: 32, 128>}, {transform_indices = @transform_6, window_bounds = array<i64: 1, 128>}, {transform_indices = @transform_7, window_bounds = array<i64: 16, 128>}]} {
    %c0_i32 = arith.constant 0 : i32
    %0 = arith.cmpi eq, %arg1, %c0_i32 : i32
    %1 = arith.extui %0 : i1 to i32
    %c0_i32_0 = arith.constant 0 : i32
    %2 = arith.cmpi ne, %1, %c0_i32_0 : i32
    scf.if %2 {
      %c0_8 = arith.constant 0 : index
      %c0_9 = arith.constant 0 : index
      %10 = vector.load %arg2[%c0_8, %c0_9] : memref<16x32xf32, #tpu.memory_space<vmem>>, vector<16x32xf32>
      %c0_10 = arith.constant 0 : index
      %c0_11 = arith.constant 0 : index
      %11 = vector.load %arg3[%c0_10, %c0_11] : memref<32x32xf32, #tpu.memory_space<vmem>>, vector<32x32xf32>
      %cst_12 = arith.constant dense<0.000000e+00> : vector<16x32xf32>
      %12 = tpu.matmul %10, %11, %cst_12 {dimension_numbers = #tpu.dot_dimension_numbers<[1], [0], [0], [1], [0, 0, 1, 1], [], []>} : vector<16x32xf32>, vector<32x32xf32>, vector<16x32xf32> -> vector<16x32xf32>
      %c0_13 = arith.constant 0 : index
      %c0_14 = arith.constant 0 : index
      %13 = vector.load %arg4[%c0_13, %c0_14] : memref<1x32xf32, #tpu.memory_space<vmem>>, vector<1x32xf32>
      %14 = vector.broadcast %13 : vector<1x32xf32> to vector<16x32xf32>
      %15 = arith.addf %12, %14 : vector<16x32xf32>
      %cst_15 = arith.constant 5.000000e-01 : f32
      %16 = vector.broadcast %cst_15 : f32 to vector<16x32xf32>
      %17 = arith.mulf %15, %16 : vector<16x32xf32>
      %cst_16 = arith.constant 0.707106769 : f32
      %18 = vector.broadcast %cst_16 : f32 to vector<16x32xf32>
      %19 = arith.mulf %15, %18 : vector<16x32xf32>
      %20 = math.erf %19 : vector<16x32xf32>
      %cst_17 = arith.constant 1.000000e+00 : f32
      %21 = vector.broadcast %cst_17 : f32 to vector<16x32xf32>
      %22 = arith.addf %21, %20 : vector<16x32xf32>
      %23 = arith.mulf %17, %22 : vector<16x32xf32>
      %cst_18 = arith.constant dense<0.000000e+00> : vector<16xf32>
      %24 = vector.multi_reduction <add>, %23, %cst_18 [1] : vector<16x32xf32> to vector<16xf32>
      %25 = vector.shape_cast %24 : vector<16xf32> to vector<16x1xf32>
      %cst_19 = arith.constant 3.200000e+01 : f32
      %26 = vector.broadcast %cst_19 : f32 to vector<16x1xf32>
      %27 = arith.divf %25, %26 : vector<16x1xf32>
      %28 = arith.mulf %23, %23 : vector<16x32xf32>
      %cst_20 = arith.constant dense<0.000000e+00> : vector<16xf32>
      %29 = vector.multi_reduction <add>, %28, %cst_20 [1] : vector<16x32xf32> to vector<16xf32>
      %30 = vector.shape_cast %29 : vector<16xf32> to vector<16x1xf32>
      %cst_21 = arith.constant 3.200000e+01 : f32
      %31 = vector.broadcast %cst_21 : f32 to vector<16x1xf32>
      %32 = arith.divf %30, %31 : vector<16x1xf32>
      %33 = arith.mulf %27, %27 : vector<16x1xf32>
      %34 = arith.subf %32, %33 : vector<16x1xf32>
      %35 = vector.broadcast %27 : vector<16x1xf32> to vector<16x32xf32>
      %36 = arith.subf %23, %35 : vector<16x32xf32>
      %cst_22 = arith.constant 9.99999996E-13 : f32
      %37 = vector.broadcast %cst_22 : f32 to vector<16x1xf32>
      %38 = arith.addf %34, %37 : vector<16x1xf32>
      %39 = math.rsqrt %38 : vector<16x1xf32>
      %40 = vector.broadcast %39 : vector<16x1xf32> to vector<16x32xf32>
      %41 = arith.mulf %36, %40 : vector<16x32xf32>
      %c0_23 = arith.constant 0 : index
      %c0_24 = arith.constant 0 : index
      %42 = vector.load %arg5[%c0_23, %c0_24] : memref<1x32xf32, #tpu.memory_space<vmem>>, vector<1x32xf32>
      %43 = vector.broadcast %42 : vector<1x32xf32> to vector<16x32xf32>
      %44 = arith.mulf %43, %41 : vector<16x32xf32>
      %c0_25 = arith.constant 0 : index
      %c0_26 = arith.constant 0 : index
      %45 = vector.load %arg6[%c0_25, %c0_26] : memref<1x32xf32, #tpu.memory_space<vmem>>, vector<1x32xf32>
      %46 = vector.broadcast %45 : vector<1x32xf32> to vector<16x32xf32>
      %47 = arith.addf %44, %46 : vector<16x32xf32>
      %c0_27 = arith.constant 0 : index
      %c0_28 = arith.constant 0 : index
      %48 = vector.load %arg10[%c0_27, %c0_28] : memref<16x32xf32, #tpu.memory_space<vmem>>, vector<16x32xf32>
      tpu.vector_store %arg10[%c0_27, %c0_28], %47 {strides = array<i32>} : memref<16x32xf32, #tpu.memory_space<vmem>>, vector<16x32xf32>,
    } else {
    }
    %c0 = arith.constant 0 : index
    %c0_1 = arith.constant 0 : index
    %3 = vector.load %arg10[%c0, %c0_1] : memref<16x32xf32, #tpu.memory_space<vmem>>, vector<16x32xf32>
    %c0_2 = arith.constant 0 : index
    %c0_3 = arith.constant 0 : index
    %4 = vector.load %arg7[%c0_2, %c0_3] : memref<32x128xf32, #tpu.memory_space<vmem>>, vector<32x128xf32>
    %cst = arith.constant dense<0.000000e+00> : vector<16x128xf32>
    %5 = tpu.matmul %3, %4, %cst {dimension_numbers = #tpu.dot_dimension_numbers<[1], [0], [0], [1], [0, 0, 1, 1], [], []>} : vector<16x32xf32>, vector<32x128xf32>, vector<16x128xf32> -> vector<16x128xf32>
    %c0_4 = arith.constant 0 : index
    %c0_5 = arith.constant 0 : index
    %6 = vector.load %arg8[%c0_4, %c0_5] : memref<1x128xf32, #tpu.memory_space<vmem>>, vector<1x128xf32>
    %7 = vector.broadcast %6 : vector<1x128xf32> to vector<16x128xf32>
    %8 = arith.addf %5, %7 : vector<16x128xf32>
    %c0_6 = arith.constant 0 : index
    %c0_7 = arith.constant 0 : index
    %9 = vector.load %arg9[%c0_6, %c0_7] : memref<16x128xf32, #tpu.memory_space<vmem>>, vector<16x128xf32>
    tpu.vector_store %arg9[%c0_6, %c0_7], %8 {strides = array<i32>} : memref<16x128xf32, #tpu.memory_space<vmem>>, vector<16x128xf32>,
    return
  }
  func.func @transform_0(%arg0: i32, %arg1: i32) -> (i32, i32) {
    %c0_i32 = arith.constant 0 : i32
    %c0_i32_0 = arith.constant 0 : i32
    return %arg0, %c0_i32 : i32, i32
  }
  func.func @transform_1(%arg0: i32, %arg1: i32) -> (i32, i32) {
    %c0_i32 = arith.constant 0 : i32
    %c0_i32_0 = arith.constant 0 : i32
    %c0_i32_1 = arith.constant 0 : i32
    return %c0_i32, %c0_i32_0 : i32, i32
  }
  func.func @transform_2(%arg0: i32, %arg1: i32) -> (i32, i32) {
    %c0_i32 = arith.constant 0 : i32
    %c0_i32_0 = arith.constant 0 : i32
    %c0_i32_1 = arith.constant 0 : i32
    return %c0_i32, %c0_i32_0 : i32, i32
  }
  func.func @transform_3(%arg0: i32, %arg1: i32) -> (i32, i32) {
    %c0_i32 = arith.constant 0 : i32
    %c0_i32_0 = arith.constant 0 : i32
    %c0_i32_1 = arith.constant 0 : i32
    return %c0_i32, %c0_i32_0 : i32, i32
  }
  func.func @transform_4(%arg0: i32, %arg1: i32) -> (i32, i32) {
    %c0_i32 = arith.constant 0 : i32
    %c0_i32_0 = arith.constant 0 : i32
    %c0_i32_1 = arith.constant 0 : i32
    return %c0_i32, %c0_i32_0 : i32, i32
  }
  func.func @transform_5(%arg0: i32, %arg1: i32) -> (i32, i32) {
    %c0_i32 = arith.constant 0 : i32
    %c0_i32_0 = arith.constant 0 : i32
    return %c0_i32, %arg1 : i32, i32
  }
  func.func @transform_6(%arg0: i32, %arg1: i32) -> (i32, i32) {
    %c0_i32 = arith.constant 0 : i32
    %c0_i32_0 = arith.constant 0 : i32
    return %c0_i32, %arg1 : i32, i32
  }
  func.func @transform_7(%arg0: i32, %arg1: i32) -> (i32, i32) {
    %c0_i32 = arith.constant 0 : i32
    return %arg0, %arg1 : i32, i32
  }
}

module attributes {stable_mosaic.version = 11 : i64} {
  func.func @mlm_head_kernel(%arg0: i32, %arg1: i32, %arg2: memref<16x32xf32, #tpu.memory_space<vmem>>, %arg3: memref<32x32xf32, #tpu.memory_space<vmem>>, %arg4: memref<1x32xf32, #tpu.memory_space<vmem>>, %arg5: memref<1x32xf32, #tpu.memory_space<vmem>>, %arg6: memref<1x32xf32, #tpu.memory_space<vmem>>, %arg7: memref<32x128xf32, #tpu.memory_space<vmem>>, %arg8: memref<1x128xf32, #tpu.memory_space<vmem>>, %arg9: memref<16x128xf32, #tpu.memory_space<vmem>>, %arg10: memref<16x32xf32, #tpu.memory_space<vmem>>) attributes {dimension_semantics = [#tpu.dimension_semantics<parallel>, #tpu.dimension_semantics<arbitrary>], iteration_bounds = array<i64: 1, 1>, scalar_prefetch = 0 : i64, scratch_operands = 1 : i64, tpu.core_type = #tpu.core_type<tc>, window_params = [{transform_indices = @transform_0, window_bounds = array<i64: 16, 32>}, {pipeline_mode = #tpu.pipeline_mode<synchronous>, transform_indices = @transform_1, window_bounds = array<i64: 32, 32>}, {pipeline_mode = #tpu.pipeline_mode<synchronous>, transform_indices = @transform_2, window_bounds = array<i64: 1, 32>}, {pipeline_mode = #tpu.pipeline_mode<synchronous>, transform_indices = @transform_3, window_bounds = array<i64: 1, 32>}, {pipeline_mode = #tpu.pipeline_mode<synchronous>, transform_indices = @transform_4, window_bounds = array<i64: 1, 32>}, {transform_indices = @transform_5, window_bounds = array<i64: 32, 128>}, {transform_indices = @transform_6, window_bounds = array<i64: 1, 128>}, {transform_indices = @transform_7, window_bounds = array<i64: 16, 128>}]} {
    %c0_i32 = arith.constant 0 : i32
    %0 = arith.cmpi eq, %arg1, %c0_i32 : i32
    %1 = arith.extui %0 : i1 to i32
    %c0_i32_0 = arith.constant 0 : i32
    %2 = arith.cmpi ne, %1, %c0_i32_0 : i32
    scf.if %2 {
      %c0_8 = arith.constant 0 : index
      %c0_9 = arith.constant 0 : index
      %10 = vector.load %arg2[%c0_8, %c0_9] : memref<16x32xf32, #tpu.memory_space<vmem>>, vector<16x32xf32>
      %c0_10 = arith.constant 0 : index
      %c0_11 = arith.constant 0 : index
      %11 = vector.load %arg3[%c0_10, %c0_11] : memref<32x32xf32, #tpu.memory_space<vmem>>, vector<32x32xf32>
      %cst_12 = arith.constant dense<0.000000e+00> : vector<16x32xf32>
      %12 = tpu.matmul %10, %11, %cst_12 {dimension_numbers = #tpu.dot_dimension_numbers<[1], [0], [0], [1], [0, 0, 1, 1], [], []>} : vector<16x32xf32>, vector<32x32xf32>, vector<16x32xf32> -> vector<16x32xf32>
      %c0_13 = arith.constant 0 : index
      %c0_14 = arith.constant 0 : index
      %13 = vector.load %arg4[%c0_13, %c0_14] : memref<1x32xf32, #tpu.memory_space<vmem>>, vector<1x32xf32>
      %14 = vector.broadcast %13 : vector<1x32xf32> to vector<16x32xf32>
      %15 = arith.addf %12, %14 : vector<16x32xf32>
      %cst_15 = arith.constant 5.000000e-01 : f32
      %16 = vector.broadcast %cst_15 : f32 to vector<16x32xf32>
      %17 = arith.mulf %15, %16 : vector<16x32xf32>
      %cst_16 = arith.constant 0.707106769 : f32
      %18 = vector.broadcast %cst_16 : f32 to vector<16x32xf32>
      %19 = arith.mulf %15, %18 : vector<16x32xf32>
      %20 = math.erf %19 : vector<16x32xf32>
      %cst_17 = arith.constant 1.000000e+00 : f32
      %21 = vector.broadcast %cst_17 : f32 to vector<16x32xf32>
      %22 = arith.addf %21, %20 : vector<16x32xf32>
      %23 = arith.mulf %17, %22 : vector<16x32xf32>
      %cst_18 = arith.constant dense<0.000000e+00> : vector<16xf32>
      %24 = vector.multi_reduction <add>, %23, %cst_18 [1] : vector<16x32xf32> to vector<16xf32>
      %25 = vector.shape_cast %24 : vector<16xf32> to vector<16x1xf32>
      %cst_19 = arith.constant 3.200000e+01 : f32
      %26 = vector.broadcast %cst_19 : f32 to vector<16x1xf32>
      %27 = arith.divf %25, %26 : vector<16x1xf32>
      %28 = arith.mulf %23, %23 : vector<16x32xf32>
      %cst_20 = arith.constant dense<0.000000e+00> : vector<16xf32>
      %29 = vector.multi_reduction <add>, %28, %cst_20 [1] : vector<16x32xf32> to vector<16xf32>
      %30 = vector.shape_cast %29 : vector<16xf32> to vector<16x1xf32>
      %cst_21 = arith.constant 3.200000e+01 : f32
      %31 = vector.broadcast %cst_21 : f32 to vector<16x1xf32>
      %32 = arith.divf %30, %31 : vector<16x1xf32>
      %33 = arith.mulf %27, %27 : vector<16x1xf32>
      %34 = arith.subf %32, %33 : vector<16x1xf32>
      %35 = vector.broadcast %27 : vector<16x1xf32> to vector<16x32xf32>
      %36 = arith.subf %23, %35 : vector<16x32xf32>
      %cst_22 = arith.constant 9.99999996E-13 : f32
      %37 = vector.broadcast %cst_22 : f32 to vector<16x1xf32>
      %38 = arith.addf %34, %37 : vector<16x1xf32>
      %39 = math.rsqrt %38 : vector<16x1xf32>
      %40 = vector.broadcast %39 : vector<16x1xf32> to vector<16x32xf32>
      %41 = arith.mulf %36, %40 : vector<16x32xf32>
      %c0_23 = arith.constant 0 : index
      %c0_24 = arith.constant 0 : index
      %42 = vector.load %arg5[%c0_23, %c0_24] : memref<1x32xf32, #tpu.memory_space<vmem>>, vector<1x32xf32>
      %43 = vector.broadcast %42 : vector<1x32xf32> to vector<16x32xf32>
      %44 = arith.mulf %43, %41 : vector<16x32xf32>
      %c0_25 = arith.constant 0 : index
      %c0_26 = arith.constant 0 : index
      %45 = vector.load %arg6[%c0_25, %c0_26] : memref<1x32xf32, #tpu.memory_space<vmem>>, vector<1x32xf32>
      %46 = vector.broadcast %45 : vector<1x32xf32> to vector<16x32xf32>
      %47 = arith.addf %44, %46 : vector<16x32xf32>
      %c0_27 = arith.constant 0 : index
      %c0_28 = arith.constant 0 : index
      %48 = vector.load %arg10[%c0_27, %c0_28] : memref<16x32xf32, #tpu.memory_space<vmem>>, vector<16x32xf32>
      tpu.vector_store %arg10[%c0_27, %c0_28], %47 {strides = array<i32>} : memref<16x32xf32, #tpu.memory_space<vmem>>, vector<16x32xf32>,
    } else {
    }
    %c0 = arith.constant 0 : index
    %c0_1 = arith.constant 0 : index
    %3 = vector.load %arg10[%c0, %c0_1] : memref<16x32xf32, #tpu.memory_space<vmem>>, vector<16x32xf32>
    %c0_2 = arith.constant 0 : index
    %c0_3 = arith.constant 0 : index
    %4 = vector.load %arg7[%c0_2, %c0_3] : memref<32x128xf32, #tpu.memory_space<vmem>>, vector<32x128xf32>
    %cst = arith.constant dense<0.000000e+00> : vector<16x128xf32>
    %5 = tpu.matmul %3, %4, %cst {dimension_numbers = #tpu.dot_dimension_numbers<[1], [0], [0], [1], [0, 0, 1, 1], [], []>} : vector<16x32xf32>, vector<32x128xf32>, vector<16x128xf32> -> vector<16x128xf32>
    %c0_4 = arith.constant 0 : index
    %c0_5 = arith.constant 0 : index
    %6 = vector.load %arg8[%c0_4, %c0_5] : memref<1x128xf32, #tpu.memory_space<vmem>>, vector<1x128xf32>
    %7 = vector.broadcast %6 : vector<1x128xf32> to vector<16x128xf32>
    %8 = arith.addf %5, %7 : vector<16x128xf32>
    %c0_6 = arith.constant 0 : index
    %c0_7 = arith.constant 0 : index
    %9 = vector.load %arg9[%c0_6, %c0_7] : memref<16x128xf32, #tpu.memory_space<vmem>>, vector<16x128xf32>
    tpu.vector_store %arg9[%c0_6, %c0_7], %8 {strides = array<i32>} : memref<16x128xf32, #tpu.memory_space<vmem>>, vector<16x128xf32>,
    return
  }
  func.func @transform_0(%arg0: i32, %arg1: i32) -> (i32, i32) {
    %c0_i32 = arith.constant 0 : i32
    %c0_i32_0 = arith.constant 0 : i32
    return %arg0, %c0_i32 : i32, i32
  }
  func.func @transform_1(%arg0: i32, %arg1: i32) -> (i32, i32) {
    %c0_i32 = arith.constant 0 : i32
    %c0_i32_0 = arith.constant 0 : i32
    %c0_i32_1 = arith.constant 0 : i32
    return %c0_i32, %c0_i32_0 : i32, i32
  }
  func.func @transform_2(%arg0: i32, %arg1: i32) -> (i32, i32) {
    %c0_i32 = arith.constant 0 : i32
    %c0_i32_0 = arith.constant 0 : i32
    %c0_i32_1 = arith.constant 0 : i32
    return %c0_i32, %c0_i32_0 : i32, i32
  }
  func.func @transform_3(%arg0: i32, %arg1: i32) -> (i32, i32) {
    %c0_i32 = arith.constant 0 : i32
    %c0_i32_0 = arith.constant 0 : i32
    %c0_i32_1 = arith.constant 0 : i32
    return %c0_i32, %c0_i32_0 : i32, i32
  }
  func.func @transform_4(%arg0: i32, %arg1: i32) -> (i32, i32) {
    %c0_i32 = arith.constant 0 : i32
    %c0_i32_0 = arith.constant 0 : i32
    %c0_i32_1 = arith.constant 0 : i32
    return %c0_i32, %c0_i32_0 : i32, i32
  }
  func.func @transform_5(%arg0: i32, %arg1: i32) -> (i32, i32) {
    %c0_i32 = arith.constant 0 : i32
    %c0_i32_0 = arith.constant 0 : i32
    return %c0_i32, %arg1 : i32, i32
  }
  func.func @transform_6(%arg0: i32, %arg1: i32) -> (i32, i32) {
    %c0_i32 = arith.constant 0 : i32
    %c0_i32_0 = arith.constant 0 : i32
    return %c0_i32, %arg1 : i32, i32
  }
  func.func @transform_7(%arg0: i32, %arg1: i32) -> (i32, i32) {
    %c0_i32 = arith.constant 0 : i32
    return %arg0, %arg1 : i32, i32
  }
}

</mosaic_0001>

<bundles_post_ra>
// kernel: tpu_custom_call.1
= control target key start
LH: loop header
LB: loop body
LE: loop exit
PB: predicated region body
PF: predicated region fallthrough
CT: control target
= control target key end

     0   :  { %12 = vsyncpa [#allocation4], 0  ;;  %s644_s0 = inlined_call_operand.hbm [shape: f32[16,32], index: 0, kind: input, shape index: {}]   ;;  %s645_s1 = inlined_call_operand.hbm [shape: f32[32,32], index: 1, kind: input, shape index: {}]   ;;  %s646_s2 = inlined_call_operand.vmem [shape: f32[1,32], index: 2, kind: input, shape index: {}]   ;;  %s647_s3 = inlined_call_operand.vmem [shape: f32[1,32], index: 3, kind: input, shape index: {}]   ;;  %s648_s4 = inlined_call_operand.vmem [shape: f32[1,32], index: 4, kind: input, shape index: {}]   ;;  %s649_s5 = inlined_call_operand.hbm [shape: f32[32,128], index: 5, kind: input, shape index: {}]   ;;  %s650_s6 = inlined_call_operand.vmem [shape: f32[1,128], index: 6, kind: input, shape index: {}]   ;;  %s651_s7 = inlined_call_operand.hbm [shape: f32[16,128], index: 7, kind: output, shape index: {}]  }
   0x1   :  { %13 = vsyncpa [#allocation7], 0 }
   0x2   :  { %14 = vsyncpa [#allocation5], 0  ;;  %s509_s24 = smov [#allocation6]   ;;  %s510_s26 = smov [#allocation3]  }
   0x3   :  { %s32_s25 = sshll.u32 %s509_s24, 4  ;;  %s20_s27 = sshll.u32 %s510_s26, 4  ;;  %s33_s25 = int_to_ptr.vmem [resolvable:$true] %s32_s25  ;;  %s555_s27 = int_to_ptr.vmem [resolvable:$true] %s20_s27 }
   0x4   :  { %s415_s30 = scalar_lea.hbm %s645_s1, 512 }
   0x5   :  { %p416_p0 = scmp.ne.s32.totalorder %s645_s1, %s415_s30  ;;  %p419_p1 = scmp.lt.u32.totalorder %s415_s30, %s645_s1 }
   0x7   :  { %p421_p2 = pnand %p419_p1, %p416_p0 }
   0x9   :  { %424 = shalt.err (!%p421_p2)
}
   0xa   :  { %s425_s12 = scalar_lea.vmem %s33_s25, 512  ;;  %p430_p4 = scmp.lt.s32.totalorder %s33_s25, %s33_s25 }
   0xb   :  { %p426_p3 = scmp.ne.s32.totalorder %s33_s25, %s425_s12  ;;  %p431_p5 = scmp.lt.s32.totalorder %s425_s12, %s425_s12 }
   0xd   :  { %p432_p6 = por %p431_p5, %p430_p4 }
   0xf   :  { %p433_p7 = pnand %p432_p6, %p426_p3 }
  0x11   :  { %436 = shalt.err (!%p433_p7)
}
  0x12   :  { %s511_s13 = smov 128   ;;  %s512_s14 = smov 8  }
  0x13   :  { %38 = dma.hbm_to_vmem [thread:$0]  %s645_s1, 512, %s33_s25, [#allocation7], %s511_s13, %s511_s13, %s512_s14  }
  0x14   :  { %s437_s19 = scalar_lea.hbm %s644_s0, 256 }
  0x15   :  { %p438_p8 = scmp.ne.s32.totalorder %s644_s0, %s437_s19  ;;  %p441_p9 = scmp.lt.u32.totalorder %s437_s19, %s644_s0 }
  0x17   :  { %p443_p10 = pnand %p441_p9, %p438_p8 }
  0x19   :  { %446 = shalt.err (!%p443_p10)
}
  0x1a   :  { %s447_s24 = scalar_lea.vmem %s555_s27, 256  ;;  %p452_p12 = scmp.lt.s32.totalorder %s555_s27, %s555_s27 }
  0x1b   :  { %p448_p11 = scmp.ne.s32.totalorder %s555_s27, %s447_s24  ;;  %p453_p13 = scmp.lt.s32.totalorder %s447_s24, %s447_s24 }
  0x1d   :  { %p454_p0 = por %p453_p13, %p452_p12 }
  0x1f   :  { %p455_p1 = pnand %p454_p0, %p448_p11 }
  0x21   :  { %458 = shalt.err (!%p455_p1)
}
  0x22   :  { %26 = dma.hbm_to_vmem [thread:$0]  %s644_s0, 256, %s555_s27, [#allocation4], %s511_s13, %s511_s13, %s512_s14  }
  0x23   :  { %s513_s26 = smov [#allocation8]   ;;  %s459_s8 = scalar_lea.hbm %s649_s5, 512 }
  0x24   :  { %s50_s28 = sshll.u32 %s513_s26, 4  ;;  %p460_p2 = scmp.ne.s32.totalorder %s649_s5, %s459_s8  ;;  %s51_s28 = int_to_ptr.vmem [resolvable:$true] %s50_s28 }
  0x25   :  { %p463_p3 = scmp.lt.u32.totalorder %s459_s8, %s649_s5 }
  0x27   :  { %p465_p4 = pnand %p463_p3, %p460_p2 }
  0x29   :  { %468 = shalt.err (!%p465_p4)
}
  0x2a   :  { %s469_s15 = scalar_lea.vmem %s51_s28, 512  ;;  %p474_p6 = scmp.lt.s32.totalorder %s51_s28, %s51_s28 }
  0x2b   :  { %p470_p5 = scmp.ne.s32.totalorder %s51_s28, %s469_s15  ;;  %p475_p7 = scmp.lt.s32.totalorder %s469_s15, %s469_s15 }
  0x2d   :  { %p476_p8 = por %p475_p7, %p474_p6 }
  0x2f   :  { %p477_p9 = pnand %p476_p8, %p470_p5 }
  0x31   :  { %480 = shalt.err (!%p477_p9)
}
  0x32   :  { %56 = dma.hbm_to_vmem [thread:$0]  %s649_s5, 512, %s51_s28, [#allocation7], %s511_s13, %s511_s13, %s512_s14  }
  0x33   :  { %503 = dma.done.wait [#allocation4], 256  }
  0x34   :  { %504 = vsyncadd [#allocation4], 4294967040 }
  0x35   :  { %505 = dma.done.wait [#allocation7], 1024  }
  0x36   :  { %506 = vsyncadd [#allocation7], 4294966272  ;;  %vm85_vm0 = vcmask 261120   ;;  %v74_v0 = vld [vmem:[#allocation6] sm:$0xff]  ;;  %v75_v1 = vld [vmem:[#allocation6 + $0x8] sm:$0xff] }
  0x37   :  { %v76_v2 = vld [vmem:[#allocation6 + $0x10] sm:$0xff]  ;;  %v385_v3 = vpack.c.bf16 %v75_v1, %v74_v0  ;;  %v77_v4 = vld [vmem:[#allocation6 + $0x18] sm:$0xff]  ;;  %v343_v8 = vld [vmem:[%s646_s2] ss:$0 sm:$0xff] }
  0x38   :  { %v72_v5 = vld [vmem:[#allocation3] sm:$0xff]  ;;  %v389_v6 = vpack.c.bf16 %v77_v4, %v76_v2  ;;  %v73_v7 = vld [vmem:[#allocation3 + $0x8] sm:$0xff]  ;;  %v230_v29 = vld [vmem:[#allocation8] sm:$0xff] }
  0x39   :  { %371 = vmatprep.mubr.msk.f32.mxu0 %vm85_vm0, %v72_v5  ;;  %386 = vmatprep.subr.bf16.mxu0 %v385_v3  ;;  %v231_v30 = vld [vmem:[#allocation8 + $0x8] sm:$0xff]  ;;  %v232_v32 = vld [vmem:[#allocation8 + $0x10] sm:$0xff]  ;;  %v233_v33 = vld [vmem:[#allocation8 + $0x18] sm:$0xff] }
  0x3a   :  { %388 = vmatpush3.bf16.msra.mxu0 %v385_v3  ;;  %v393_v31 = vpack.c.bf16 %v231_v30, %v230_v29  ;;  %v397_v34 = vpack.c.bf16 %v233_v33, %v232_v32  ;;  %v346_v51 = vld [vmem:[%s647_s3] ss:$0 sm:$0xff] }
  0x3b   :  { %390 = vmatprep.subr.bf16.mxu0 %v389_v6  ;;  %v347_v53 = vld [vmem:[%s648_s4] ss:$0 sm:$0xff]  ;;  %s514_s4 = smov [#allocation9]  }
  0x3c   :  { %394 = vmatprep.subr.bf16.mxu1 %v393_v31  ;;  %v348_v63 = vld [vmem:[%s650_s6] ss:$0 sm:$0xff]  ;;  %s330_s21 = sshll.u32 %s514_s4, 4  ;;  %s331_s21 = int_to_ptr.vmem [resolvable:$true] %s330_s21 }
  0x3d   :  { %396 = vmatpush3.bf16.msra.mxu1 %v393_v31  ;;  %s481_s22 = scalar_lea.vmem %s331_s21, 256  ;;  %p486_p11 = scmp.lt.s32.totalorder %s331_s21, %s331_s21 }
  0x3e   :  { %392 = vmatpush3.bf16.msra.mxu0 %v389_v6  ;;  %398 = vmatprep.subr.bf16.mxu1 %v397_v34  ;;  %p482_p10 = scmp.ne.s32.totalorder %s331_s21, %s481_s22  ;;  %p487_p12 = scmp.lt.s32.totalorder %s481_s22, %s481_s22 }
  0x40   :  { %p488_p13 = por %p487_p12, %p486_p11 }
  0x41   :  { %372 = vmatmul.mubr.msk.f32.vlgmr.msra.gmra.mrb[0].mxu0 %vm85_vm0, %v73_v7  ;;  %400 = vmatpush3.bf16.msra.mxu1 %v397_v34 }
  0x42   :  { %p489_p0 = pnand %p488_p13, %p482_p10 }
 0x114   :  { %v373_v9 = vpop.f32.mrb[0].mxu0 }
 0x115   :  { %v164_v10 = vadd.f32 %v373_v9, %v343_v8  ;;  %v158_v11 = vpop.f32.mrb[1].mxu0 }
 0x116   :  { %v159_v12 = vadd.f32 %v343_v8, %v158_v11 }
 0x117   :  { %v170_v13 = vmul.f32 0.70710677, %v164_v10  ;;  %v168_v18 = vmul.f32 0.5, %v164_v10 }
 0x118   :  { %v169_v14 = vmul.f32 0.70710677, %v159_v12  ;;  %v167_v19 = vmul.f32 0.5, %v159_v12 }
 0x119   :  { %407 = verf.f32 %v170_v13 }
 0x11a   :  { %409 = verf.f32 %v169_v14 }
 0x123   :  { %v408_v15 = vpop.eup %407 }
 0x124   :  { %v410_v16 = vpop.eup %409  ;;  %v174_v17 = vadd.f32 1.0, %v408_v15 }
 0x125   :  { %v173_v20 = vadd.f32 1.0, %v410_v16 }
 0x126   :  { %v176_v21 = vmul.f32 %v174_v17, %v168_v18 }
 0x127   :  { %v175_v22 = vmul.f32 %v173_v20, %v167_v19 }
 0x128   :  { %v187_v26 = vmul.f32 %v176_v21, %v176_v21  ;;  %v180_v27 = vsel %vm85_vm0, %v176_v21, 0.0 }
 0x129   :  { %v177_v23 = vsel %vm85_vm0, %v175_v22, 0.0  ;;  %v186_v24 = vmul.f32 %v175_v22, %v175_v22 }
 0x12a   :  { %178 = vadd.xlane.f32.xlu0 %v177_v23  ;;  %v191_v28 = vsel %vm85_vm0, %v187_v26, 0.0 }
 0x12b   :  { %v188_v25 = vsel %vm85_vm0, %v186_v24, 0.0 }
 0x12c   :  { %189 = vadd.xlane.f32.xlu1 %v188_v25 }
 0x12e   :  { %181 = vadd.xlane.f32.xlu0 %v180_v27 }
 0x130   :  { %192 = vadd.xlane.f32.xlu1 %v191_v28 }
 0x1b7   :  { %v179_v35 = vpop.xlane.xlu0 %178 }
 0x1b8   :  { %v184_v36 = vmul.f32 0.03125, %v179_v35 }
 0x1b9   :  { %v190_v37 = vpop.xlane.xlu1 %189 }
 0x1ba   :  { %v196_v38 = vmul.f32 %v184_v36, %v184_v36  ;;  %v194_v39 = vmul.f32 0.03125, %v190_v37  ;;  %v200_v49 = vsub.f32 %v175_v22, %v184_v36 }
 0x1bb   :  { %v182_v40 = vpop.xlane.xlu0 %181 }
 0x1bc   :  { %v198_v41 = vsub.f32 %v194_v39, %v196_v38  ;;  %v185_v42 = vmul.f32 0.03125, %v182_v40 }
 0x1bd   :  { %v193_v43 = vpop.xlane.xlu1 %192 }
 0x1be   :  { %v202_v44 = vadd.f32 1e-12, %v198_v41  ;;  %v197_v45 = vmul.f32 %v185_v42, %v185_v42  ;;  %v195_v46 = vmul.f32 0.03125, %v193_v43  ;;  %v201_v55 = vsub.f32 %v176_v21, %v185_v42 }
 0x1c0   :  { %411 = vrsqrt.f32 %v202_v44  ;;  %v199_v47 = vsub.f32 %v195_v46, %v197_v45 }
 0x1c2   :  { %v203_v48 = vadd.f32 1e-12, %v199_v47 }
 0x1c4   :  { %413 = vrsqrt.f32 %v203_v48 }
 0x1ca   :  { %v412_v50 = vpop.eup %411 }
 0x1cb   :  { %v206_v52 = vmul.f32 %v412_v50, %v200_v49 }
 0x1cd   :  { %v215_v54 = vmul.f32 %v346_v51, %v206_v52 }
 0x1ce   :  { %v414_v56 = vpop.eup %413 }
 0x1cf   :  { %v224_v57 = vadd.f32 %v347_v53, %v215_v54  ;;  %v207_v58 = vmul.f32 %v414_v56, %v201_v55 }
 0x1d1   :  { %226 = vst.msk [vmem:[#allocation2] sm:$0xff] %vm85_vm0, %v224_v57  ;;  %v216_v59 = vmul.f32 %v346_v51, %v207_v58 }
 0x1d3   :  { %v225_v60 = vadd.f32 %v347_v53, %v216_v59 }
 0x1d5   :  { %227 = vst.msk [vmem:[#allocation2 + $0x8] sm:$0xff] %vm85_vm0, %v225_v60 }
 0x1d8   :  { %v228_v61 = vld [vmem:[#allocation2] sm:$0xff] }
 0x1d9   :  { %382 = vmatprep.mubr.msk.f32.mxu1 %vm85_vm0, %v228_v61 }
 0x1dc   :  { %v229_v62 = vld [vmem:[#allocation2 + $0x8] sm:$0xff] }
 0x1dd   :  { %383 = vmatmul.mubr.msk.f32.vlgmr.msra.gmra.mrb[0].mxu1 %vm85_vm0, %v229_v62 }
 0x2b0   :  { %v384_v0 = vpop.f32.mrb[0].mxu1 }
 0x2b1   :  { %v320_v1 = vadd.f32 %v384_v0, %v348_v63  ;;  %v314_v2 = vpop.f32.mrb[1].mxu1 }
 0x2b2   :  { %v315_v3 = vadd.f32 %v348_v63, %v314_v2 }
 0x2b3   :  { %324 = vst [vmem:[#allocation9 + $0x8] sm:$0xff] %v320_v1 }
 0x2b4   :  { %323 = vst [vmem:[#allocation9] sm:$0xff] %v315_v3 }
 0x2b5   :  { %492 = shalt.err (!%p489_p0)
}
 0x2b6   :  { %s493_s6 = scalar_lea.hbm %s651_s7, 256 }
 0x2b7   :  { %p494_p1 = scmp.ne.s32.totalorder %s651_s7, %s493_s6  ;;  %p497_p2 = scmp.lt.u32.totalorder %s493_s6, %s651_s7 }
 0x2b9   :  { %p499_p3 = pnand %p497_p2, %p494_p1 }
 0x2bb   :  { %502 = shalt.err (!%p499_p3)
}
 0x2bc   :  { %336 = dma.vmem_to_hbm [thread:$0]  %s331_s21, 256, %s651_s7, [#allocation5], %s511_s13, %s511_s13, %s512_s14  }
 0x2bd   :  { %507 = dma.done.wait [#allocation5], 256  }
 0x2be   :  { %508 = vsyncadd [#allocation5], 4294967040 }
 0x2bf   :  { %340 = vsyncpa [#allocation4], 1 }
 0x2c0   :  { %341 = vsyncpa [#allocation7], 1 }
 0x2c1   :  { %342 = vsyncpa [#allocation5], 1 }

// kernel: tpu_custom_call.1
= control target key start
LH: loop header
LB: loop body
LE: loop exit
PB: predicated region body
PF: predicated region fallthrough
CT: control target
= control target key end

     0   :  { %12 = vsyncpa [#allocation4], 0  ;;  %s644_s0 = inlined_call_operand.hbm [shape: f32[16,32], index: 0, kind: input, shape index: {}]   ;;  %s645_s1 = inlined_call_operand.hbm [shape: f32[32,32], index: 1, kind: input, shape index: {}]   ;;  %s646_s2 = inlined_call_operand.vmem [shape: f32[1,32], index: 2, kind: input, shape index: {}]   ;;  %s647_s3 = inlined_call_operand.vmem [shape: f32[1,32], index: 3, kind: input, shape index: {}]   ;;  %s648_s4 = inlined_call_operand.vmem [shape: f32[1,32], index: 4, kind: input, shape index: {}]   ;;  %s649_s5 = inlined_call_operand.hbm [shape: f32[32,128], index: 5, kind: input, shape index: {}]   ;;  %s650_s6 = inlined_call_operand.vmem [shape: f32[1,128], index: 6, kind: input, shape index: {}]   ;;  %s651_s7 = inlined_call_operand.hbm [shape: f32[16,128], index: 7, kind: output, shape index: {}]  }
   0x1   :  { %13 = vsyncpa [#allocation7], 0 }
   0x2   :  { %14 = vsyncpa [#allocation5], 0  ;;  %s509_s24 = smov [#allocation6]   ;;  %s510_s26 = smov [#allocation3]  }
   0x3   :  { %s32_s25 = sshll.u32 %s509_s24, 4  ;;  %s20_s27 = sshll.u32 %s510_s26, 4  ;;  %s33_s25 = int_to_ptr.vmem [resolvable:$true] %s32_s25  ;;  %s555_s27 = int_to_ptr.vmem [resolvable:$true] %s20_s27 }
   0x4   :  { %s415_s30 = scalar_lea.hbm %s645_s1, 512 }
   0x5   :  { %p416_p0 = scmp.ne.s32.totalorder %s645_s1, %s415_s30  ;;  %p419_p1 = scmp.lt.u32.totalorder %s415_s30, %s645_s1 }
   0x7   :  { %p421_p2 = pnand %p419_p1, %p416_p0 }
   0x9   :  { %424 = shalt.err (!%p421_p2)
}
   0xa   :  { %s425_s12 = scalar_lea.vmem %s33_s25, 512  ;;  %p430_p4 = scmp.lt.s32.totalorder %s33_s25, %s33_s25 }
   0xb   :  { %p426_p3 = scmp.ne.s32.totalorder %s33_s25, %s425_s12  ;;  %p431_p5 = scmp.lt.s32.totalorder %s425_s12, %s425_s12 }
   0xd   :  { %p432_p6 = por %p431_p5, %p430_p4 }
   0xf   :  { %p433_p7 = pnand %p432_p6, %p426_p3 }
  0x11   :  { %436 = shalt.err (!%p433_p7)
}
  0x12   :  { %s511_s13 = smov 128   ;;  %s512_s14 = smov 8  }
  0x13   :  { %38 = dma.hbm_to_vmem [thread:$0]  %s645_s1, 512, %s33_s25, [#allocation7], %s511_s13, %s511_s13, %s512_s14  }
  0x14   :  { %s437_s19 = scalar_lea.hbm %s644_s0, 256 }
  0x15   :  { %p438_p8 = scmp.ne.s32.totalorder %s644_s0, %s437_s19  ;;  %p441_p9 = scmp.lt.u32.totalorder %s437_s19, %s644_s0 }
  0x17   :  { %p443_p10 = pnand %p441_p9, %p438_p8 }
  0x19   :  { %446 = shalt.err (!%p443_p10)
}
  0x1a   :  { %s447_s24 = scalar_lea.vmem %s555_s27, 256  ;;  %p452_p12 = scmp.lt.s32.totalorder %s555_s27, %s555_s27 }
  0x1b   :  { %p448_p11 = scmp.ne.s32.totalorder %s555_s27, %s447_s24  ;;  %p453_p13 = scmp.lt.s32.totalorder %s447_s24, %s447_s24 }
  0x1d   :  { %p454_p0 = por %p453_p13, %p452_p12 }
  0x1f   :  { %p455_p1 = pnand %p454_p0, %p448_p11 }
  0x21   :  { %458 = shalt.err (!%p455_p1)
}
  0x22   :  { %26 = dma.hbm_to_vmem [thread:$0]  %s644_s0, 256, %s555_s27, [#allocation4], %s511_s13, %s511_s13, %s512_s14  }
  0x23   :  { %s513_s26 = smov [#allocation8]   ;;  %s459_s8 = scalar_lea.hbm %s649_s5, 512 }
  0x24   :  { %s50_s28 = sshll.u32 %s513_s26, 4  ;;  %p460_p2 = scmp.ne.s32.totalorder %s649_s5, %s459_s8  ;;  %s51_s28 = int_to_ptr.vmem [resolvable:$true] %s50_s28 }
  0x25   :  { %p463_p3 = scmp.lt.u32.totalorder %s459_s8, %s649_s5 }
  0x27   :  { %p465_p4 = pnand %p463_p3, %p460_p2 }
  0x29   :  { %468 = shalt.err (!%p465_p4)
}
  0x2a   :  { %s469_s15 = scalar_lea.vmem %s51_s28, 512  ;;  %p474_p6 = scmp.lt.s32.totalorder %s51_s28, %s51_s28 }
  0x2b   :  { %p470_p5 = scmp.ne.s32.totalorder %s51_s28, %s469_s15  ;;  %p475_p7 = scmp.lt.s32.totalorder %s469_s15, %s469_s15 }
  0x2d   :  { %p476_p8 = por %p475_p7, %p474_p6 }
  0x2f   :  { %p477_p9 = pnand %p476_p8, %p470_p5 }
  0x31   :  { %480 = shalt.err (!%p477_p9)
}
  0x32   :  { %56 = dma.hbm_to_vmem [thread:$0]  %s649_s5, 512, %s51_s28, [#allocation7], %s511_s13, %s511_s13, %s512_s14  }
  0x33   :  { %503 = dma.done.wait [#allocation4], 256  }
  0x34   :  { %504 = vsyncadd [#allocation4], 4294967040 }
  0x35   :  { %505 = dma.done.wait [#allocation7], 1024  }
  0x36   :  { %506 = vsyncadd [#allocation7], 4294966272  ;;  %vm85_vm0 = vcmask 261120   ;;  %v74_v0 = vld [vmem:[#allocation6] sm:$0xff]  ;;  %v75_v1 = vld [vmem:[#allocation6 + $0x8] sm:$0xff] }
  0x37   :  { %v76_v2 = vld [vmem:[#allocation6 + $0x10] sm:$0xff]  ;;  %v385_v3 = vpack.c.bf16 %v75_v1, %v74_v0  ;;  %v77_v4 = vld [vmem:[#allocation6 + $0x18] sm:$0xff]  ;;  %v343_v8 = vld [vmem:[%s646_s2] ss:$0 sm:$0xff] }
  0x38   :  { %v72_v5 = vld [vmem:[#allocation3] sm:$0xff]  ;;  %v389_v6 = vpack.c.bf16 %v77_v4, %v76_v2  ;;  %v73_v7 = vld [vmem:[#allocation3 + $0x8] sm:$0xff]  ;;  %v230_v29 = vld [vmem:[#allocation8] sm:$0xff] }
  0x39   :  { %371 = vmatprep.mubr.msk.f32.mxu0 %vm85_vm0, %v72_v5  ;;  %386 = vmatprep.subr.bf16.mxu0 %v385_v3  ;;  %v231_v30 = vld [vmem:[#allocation8 + $0x8] sm:$0xff]  ;;  %v232_v32 = vld [vmem:[#allocation8 + $0x10] sm:$0xff]  ;;  %v233_v33 = vld [vmem:[#allocation8 + $0x18] sm:$0xff] }
  0x3a   :  { %388 = vmatpush3.bf16.msra.mxu0 %v385_v3  ;;  %v393_v31 = vpack.c.bf16 %v231_v30, %v230_v29  ;;  %v397_v34 = vpack.c.bf16 %v233_v33, %v232_v32  ;;  %v346_v51 = vld [vmem:[%s647_s3] ss:$0 sm:$0xff] }
  0x3b   :  { %390 = vmatprep.subr.bf16.mxu0 %v389_v6  ;;  %v347_v53 = vld [vmem:[%s648_s4] ss:$0 sm:$0xff]  ;;  %s514_s4 = smov [#allocation9]  }
  0x3c   :  { %394 = vmatprep.subr.bf16.mxu1 %v393_v31  ;;  %v348_v63 = vld [vmem:[%s650_s6] ss:$0 sm:$0xff]  ;;  %s330_s21 = sshll.u32 %s514_s4, 4  ;;  %s331_s21 = int_to_ptr.vmem [resolvable:$true] %s330_s21 }
  0x3d   :  { %396 = vmatpush3.bf16.msra.mxu1 %v393_v31  ;;  %s481_s22 = scalar_lea.vmem %s331_s21, 256  ;;  %p486_p11 = scmp.lt.s32.totalorder %s331_s21, %s331_s21 }
  0x3e   :  { %392 = vmatpush3.bf16.msra.mxu0 %v389_v6  ;;  %398 = vmatprep.subr.bf16.mxu1 %v397_v34  ;;  %p482_p10 = scmp.ne.s32.totalorder %s331_s21, %s481_s22  ;;  %p487_p12 = scmp.lt.s32.totalorder %s481_s22, %s481_s22 }
  0x40   :  { %p488_p13 = por %p487_p12, %p486_p11 }
  0x41   :  { %372 = vmatmul.mubr.msk.f32.vlgmr.msra.gmra.mrb[0].mxu0 %vm85_vm0, %v73_v7  ;;  %400 = vmatpush3.bf16.msra.mxu1 %v397_v34 }
  0x42   :  { %p489_p0 = pnand %p488_p13, %p482_p10 }
 0x114   :  { %v373_v9 = vpop.f32.mrb[0].mxu0 }
 0x115   :  { %v164_v10 = vadd.f32 %v373_v9, %v343_v8  ;;  %v158_v11 = vpop.f32.mrb[1].mxu0 }
 0x116   :  { %v159_v12 = vadd.f32 %v343_v8, %v158_v11 }
 0x117   :  { %v170_v13 = vmul.f32 0.70710677, %v164_v10  ;;  %v168_v18 = vmul.f32 0.5, %v164_v10 }
 0x118   :  { %v169_v14 = vmul.f32 0.70710677, %v159_v12  ;;  %v167_v19 = vmul.f32 0.5, %v159_v12 }
 0x119   :  { %407 = verf.f32 %v170_v13 }
 0x11a   :  { %409 = verf.f32 %v169_v14 }
 0x123   :  { %v408_v15 = vpop.eup %407 }
 0x124   :  { %v410_v16 = vpop.eup %409  ;;  %v174_v17 = vadd.f32 1.0, %v408_v15 }
 0x125   :  { %v173_v20 = vadd.f32 1.0, %v410_v16 }
 0x126   :  { %v176_v21 = vmul.f32 %v174_v17, %v168_v18 }
 0x127   :  { %v175_v22 = vmul.f32 %v173_v20, %v167_v19 }
 0x128   :  { %v187_v26 = vmul.f32 %v176_v21, %v176_v21  ;;  %v180_v27 = vsel %vm85_vm0, %v176_v21, 0.0 }
 0x129   :  { %v177_v23 = vsel %vm85_vm0, %v175_v22, 0.0  ;;  %v186_v24 = vmul.f32 %v175_v22, %v175_v22 }
 0x12a   :  { %178 = vadd.xlane.f32.xlu0 %v177_v23  ;;  %v191_v28 = vsel %vm85_vm0, %v187_v26, 0.0 }
 0x12b   :  { %v188_v25 = vsel %vm85_vm0, %v186_v24, 0.0 }
 0x12c   :  { %189 = vadd.xlane.f32.xlu1 %v188_v25 }
 0x12e   :  { %181 = vadd.xlane.f32.xlu0 %v180_v27 }
 0x130   :  { %192 = vadd.xlane.f32.xlu1 %v191_v28 }
 0x1b7   :  { %v179_v35 = vpop.xlane.xlu0 %178 }
 0x1b8   :  { %v184_v36 = vmul.f32 0.03125, %v179_v35 }
 0x1b9   :  { %v190_v37 = vpop.xlane.xlu1 %189 }
 0x1ba   :  { %v196_v38 = vmul.f32 %v184_v36, %v184_v36  ;;  %v194_v39 = vmul.f32 0.03125, %v190_v37  ;;  %v200_v49 = vsub.f32 %v175_v22, %v184_v36 }
 0x1bb   :  { %v182_v40 = vpop.xlane.xlu0 %181 }
 0x1bc   :  { %v198_v41 = vsub.f32 %v194_v39, %v196_v38  ;;  %v185_v42 = vmul.f32 0.03125, %v182_v40 }
 0x1bd   :  { %v193_v43 = vpop.xlane.xlu1 %192 }
 0x1be   :  { %v202_v44 = vadd.f32 1e-12, %v198_v41  ;;  %v197_v45 = vmul.f32 %v185_v42, %v185_v42  ;;  %v195_v46 = vmul.f32 0.03125, %v193_v43  ;;  %v201_v55 = vsub.f32 %v176_v21, %v185_v42 }
 0x1c0   :  { %411 = vrsqrt.f32 %v202_v44  ;;  %v199_v47 = vsub.f32 %v195_v46, %v197_v45 }
 0x1c2   :  { %v203_v48 = vadd.f32 1e-12, %v199_v47 }
 0x1c4   :  { %413 = vrsqrt.f32 %v203_v48 }
 0x1ca   :  { %v412_v50 = vpop.eup %411 }
 0x1cb   :  { %v206_v52 = vmul.f32 %v412_v50, %v200_v49 }
 0x1cd   :  { %v215_v54 = vmul.f32 %v346_v51, %v206_v52 }
 0x1ce   :  { %v414_v56 = vpop.eup %413 }
 0x1cf   :  { %v224_v57 = vadd.f32 %v347_v53, %v215_v54  ;;  %v207_v58 = vmul.f32 %v414_v56, %v201_v55 }
 0x1d1   :  { %226 = vst.msk [vmem:[#allocation2] sm:$0xff] %vm85_vm0, %v224_v57  ;;  %v216_v59 = vmul.f32 %v346_v51, %v207_v58 }
 0x1d3   :  { %v225_v60 = vadd.f32 %v347_v53, %v216_v59 }
 0x1d5   :  { %227 = vst.msk [vmem:[#allocation2 + $0x8] sm:$0xff] %vm85_vm0, %v225_v60 }
 0x1d8   :  { %v228_v61 = vld [vmem:[#allocation2] sm:$0xff] }
 0x1d9   :  { %382 = vmatprep.mubr.msk.f32.mxu1 %vm85_vm0, %v228_v61 }
 0x1dc   :  { %v229_v62 = vld [vmem:[#allocation2 + $0x8] sm:$0xff] }
 0x1dd   :  { %383 = vmatmul.mubr.msk.f32.vlgmr.msra.gmra.mrb[0].mxu1 %vm85_vm0, %v229_v62 }
 0x2b0   :  { %v384_v0 = vpop.f32.mrb[0].mxu1 }
 0x2b1   :  { %v320_v1 = vadd.f32 %v384_v0, %v348_v63  ;;  %v314_v2 = vpop.f32.mrb[1].mxu1 }
 0x2b2   :  { %v315_v3 = vadd.f32 %v348_v63, %v314_v2 }
 0x2b3   :  { %324 = vst [vmem:[#allocation9 + $0x8] sm:$0xff] %v320_v1 }
 0x2b4   :  { %323 = vst [vmem:[#allocation9] sm:$0xff] %v315_v3 }
 0x2b5   :  { %492 = shalt.err (!%p489_p0)
}
 0x2b6   :  { %s493_s6 = scalar_lea.hbm %s651_s7, 256 }
 0x2b7   :  { %p494_p1 = scmp.ne.s32.totalorder %s651_s7, %s493_s6  ;;  %p497_p2 = scmp.lt.u32.totalorder %s493_s6, %s651_s7 }
 0x2b9   :  { %p499_p3 = pnand %p497_p2, %p494_p1 }
 0x2bb   :  { %502 = shalt.err (!%p499_p3)
}
 0x2bc   :  { %336 = dma.vmem_to_hbm [thread:$0]  %s331_s21, 256, %s651_s7, [#allocation5], %s511_s13, %s511_s13, %s512_s14  }
 0x2bd   :  { %507 = dma.done.wait [#allocation5], 256  }
 0x2be   :  { %508 = vsyncadd [#allocation5], 4294967040 }
 0x2bf   :  { %340 = vsyncpa [#allocation4], 1 }
 0x2c0   :  { %341 = vsyncpa [#allocation7], 1 }
 0x2c1   :  { %342 = vsyncpa [#allocation5], 1 }

</bundles_post_ra>
